<compile_context>
chip_gen: v7x
topology: tpu7x:2x2x1
jax: 0.10.0
libtpu: 0.0.40
codegen_flags: <defaults>
</compile_context>

<pallas_src>
import jax
import jax.numpy as jnp
import numpy as np
from jax.experimental import pallas as pl
from jax.experimental.pallas import tpu as pltpu


def gat_fused_kernel(h_ref, w_ref, a_ref, adj_ref, bias_ref, out_ref):
    # h_ref:    (n, f_in)                 node features
    # w_ref:    (f_in, n_head*f_out)      all-head projection, lane-dense
    # a_ref:    (n_head*f_out, 2*n_head)  block-diagonal [a_src | a_dst] packing
    # adj_ref:  (n, n) int8               adjacency {0, 1}
    # bias_ref: (1, n_head*f_out)         bias tiled per head
    # out_ref:  (n, n_head*f_out)         lane-dense output slab
    n_head = a_ref.shape[1] // 2
    f_out = w_ref.shape[1] // n_head

    h = h_ref[...]
    w = w_ref[...]
    # One MXU matmul for all heads: (n, f_in) @ (f_in, n_head*f_out).
    hp = jnp.dot(h, w, preferred_element_type=jnp.float32)               # (n, 128)

    # attn_src / attn_dst for every head via a single MXU contraction.
    coef = jnp.dot(hp, a_ref[...], preferred_element_type=jnp.float32)   # (n, 2*n_head)
    dst_t = coef[:, n_head:].T                                           # (n_head, n), one tiny transpose

    mask = adj_ref[...].astype(jnp.int32) > 0                            # (n, n) bool

    outs = []
    for k in range(n_head):                                              # unrolled (n_head is small, static)
        attn = coef[:, k:k + 1] + dst_t[k:k + 1, :]                      # (n, n) src[i] + dst[j]
        attn = jnp.where(attn > 0, attn, 0.2 * attn)                     # LeakyReLU(0.2)
        # Large finite negative instead of -inf: identical softmax result when
        # every row has >=1 neighbor (self-loops), NaN-free for isolated nodes.
        attn = jnp.where(mask, attn, -1e30)
        m = jnp.max(attn, axis=-1, keepdims=True)
        e = jnp.exp(attn - m)
        s = jnp.sum(e, axis=-1, keepdims=True)                           # (n, 1)
        # EUP approximate reciprocal; two Newton steps restore full f32
        # precision regardless of the hardware approximation quality.
        inv = pl.reciprocal(s, approx=True)
        inv = inv * (2.0 - s * inv)
        inv = inv * (2.0 - s * inv)
        o = jnp.dot(e, hp[:, k * f_out:(k + 1) * f_out],
                    preferred_element_type=jnp.float32)                  # (n, f_out)
        outs.append(o * inv)                                             # softmax scale folded into epilogue
    # TODO(synk): attention dropout is identity in eval mode; training-time dropout not implemented.

    out = jnp.concatenate(outs, axis=-1) + bias_ref[...]                 # (n, n_head*f_out), lane-dense
    out_ref[...] = out.astype(out_ref.dtype)


def multi_head_graph_attention(h, adj, w, a_src, a_dst, bias):
    n, f_in = h.shape
    n_head, _, f_out = w.shape
    f_all = n_head * f_out

    # Layout plumbing in the wrapper (plain XLA): pack per-head params into
    # lane-dense slabs consumed by the fused kernel.
    w_all = jnp.transpose(w, (1, 0, 2)).reshape(f_in, f_all)             # (f_in, n_head*f_out)
    eye = jnp.eye(n_head, dtype=w.dtype)
    a_src_mat = jnp.einsum("hf,hk->hfk", a_src.reshape(n_head, f_out), eye).reshape(f_all, n_head)
    a_dst_mat = jnp.einsum("hf,hk->hfk", a_dst.reshape(n_head, f_out), eye).reshape(f_all, n_head)
    a_mat = jnp.concatenate([a_src_mat, a_dst_mat], axis=1)              # (n_head*f_out, 2*n_head)
    bias_all = jnp.tile(bias.reshape(1, f_out), (1, n_head))             # (1, n_head*f_out)
    adj_i8 = adj.astype(jnp.int8)                                        # O(n^2) input at 1 byte/elem

    out_flat = pl.pallas_call(
        gat_fused_kernel,
        out_shape=jax.ShapeDtypeStruct((n, f_all), jnp.float32),
        in_specs=[
            pl.BlockSpec(memory_space=pltpu.MemorySpace.VMEM),           # h
            pl.BlockSpec(memory_space=pltpu.MemorySpace.VMEM),           # w_all
            pl.BlockSpec(memory_space=pltpu.MemorySpace.VMEM),           # a_mat
            pl.BlockSpec(memory_space=pltpu.MemorySpace.VMEM),           # adj (int8)
            pl.BlockSpec(memory_space=pltpu.MemorySpace.VMEM),           # bias
        ],
        out_specs=pl.BlockSpec(memory_space=pltpu.MemorySpace.VMEM),
    )(h, w_all, a_mat, adj_i8, bias_all)

    # (n, n_head*f_out) -> (n_head, n, f_out)
    return jnp.transpose(out_flat.reshape(n, n_head, f_out), (1, 0, 2))


def ref_forward(h, adj, w, a_src, a_dst, bias):
    # Pure-JAX reference matching the PyTorch forward (eval mode).
    h_prime = jnp.einsum("nf,hfo->hno", h, w)
    attn_src = jnp.einsum("hno,hoi->hni", h_prime, a_src)
    attn_dst = jnp.einsum("hno,hoi->hni", h_prime, a_dst)
    attn = attn_src + jnp.transpose(attn_dst, (0, 2, 1))
    attn = jnp.where(attn > 0, attn, 0.2 * attn)
    attn = jnp.where(adj[None, :, :] > 0, attn, -jnp.inf)
    attn = jax.nn.softmax(attn, axis=-1)
    out = jnp.einsum("hnm,hmo->hno", attn, h_prime)
    return out + bias


def xavier_uniform(key, shape, fan_in, fan_out):
    bound = float(np.sqrt(6.0 / (fan_in + fan_out)))
    return jax.random.uniform(key, shape, jnp.float32, -bound, bound)


if __name__ == "__main__":
    n_head, f_in, f_out = 4, 16, 32
    n = 16  # number of graph nodes

    key = jax.random.PRNGKey(0)
    k_h, k_adj, k_w, k_as, k_ad = jax.random.split(key, 5)

    # Deterministic parameter init (shapes from module __init__).
    w = xavier_uniform(k_w, (n_head, f_in, f_out), f_in, n_head * f_out)
    a_src = xavier_uniform(k_as, (n_head, f_out, 1), f_out, n_head)
    a_dst = xavier_uniform(k_ad, (n_head, f_out, 1), f_out, n_head)
    bias = jnp.zeros((f_out,), jnp.float32)

    # Inputs: node features and a {0,1} adjacency with self-loops.
    h = jax.random.normal(k_h, (n, f_in), jnp.float32)
    adj = (jax.random.uniform(k_adj, (n, n)) > 0.5).astype(jnp.int32)
    adj = jnp.maximum(adj, adj.T)                          # symmetric
    adj = jnp.maximum(adj, jnp.eye(n, dtype=jnp.int32))    # self-loops

    out = multi_head_graph_attention(h, adj, w, a_src, a_dst, bias)
    out = jax.block_until_ready(out)

    ref = ref_forward(h, adj, w, a_src, a_dst, bias)
    np.testing.assert_allclose(np.asarray(out), np.asarray(ref), rtol=1e-5, atol=1e-5)

    print("KERNEL_OK")
</pallas_src>

<mosaic_0001>
module attributes {stable_mosaic.version = 11 : i64} {
  func.func @gat_fused_kernel(%arg0: memref<16x16xf32, #tpu.memory_space<vmem>>, %arg1: memref<16x128xf32, #tpu.memory_space<vmem>>, %arg2: memref<128x8xf32, #tpu.memory_space<vmem>>, %arg3: memref<16x16xi8, #tpu.memory_space<vmem>>, %arg4: memref<1x128xf32, #tpu.memory_space<vmem>>, %arg5: memref<16x128xf32, #tpu.memory_space<vmem>>) attributes {dimension_semantics = [], scalar_prefetch = 0 : i64, scratch_operands = 0 : i64, tpu.core_type = #tpu.core_type<tc>} {
    %c0 = arith.constant 0 : index
    %c0_0 = arith.constant 0 : index
    %0 = vector.load %arg0[%c0, %c0_0] : memref<16x16xf32, #tpu.memory_space<vmem>>, vector<16x16xf32>
    %c0_1 = arith.constant 0 : index
    %c0_2 = arith.constant 0 : index
    %1 = vector.load %arg1[%c0_1, %c0_2] : memref<16x128xf32, #tpu.memory_space<vmem>>, vector<16x128xf32>
    %cst = arith.constant dense<0.000000e+00> : vector<16x128xf32>
    %2 = tpu.matmul %0, %1, %cst {dimension_numbers = #tpu.dot_dimension_numbers<[1], [0], [0], [1], [0, 0, 1, 1], [], []>} : vector<16x16xf32>, vector<16x128xf32>, vector<16x128xf32> -> vector<16x128xf32>
    %c0_3 = arith.constant 0 : index
    %c0_4 = arith.constant 0 : index
    %3 = vector.load %arg2[%c0_3, %c0_4] : memref<128x8xf32, #tpu.memory_space<vmem>>, vector<128x8xf32>
    %cst_5 = arith.constant dense<0.000000e+00> : vector<16x8xf32>
    %4 = tpu.matmul %2, %3, %cst_5 {dimension_numbers = #tpu.dot_dimension_numbers<[1], [0], [0], [1], [0, 0, 1, 1], [], []>} : vector<16x128xf32>, vector<128x8xf32>, vector<16x8xf32> -> vector<16x8xf32>
    %5 = vector.extract_strided_slice %4 {offsets = [0, 4], sizes = [16, 4], strides = [1, 1]} : vector<16x8xf32> to vector<16x4xf32>
    %6 = tpu.transpose %5, [1, 0] : vector<16x4xf32> -> vector<4x16xf32>
    %c0_6 = arith.constant 0 : index
    %c0_7 = arith.constant 0 : index
    %7 = vector.load %arg3[%c0_6, %c0_7] : memref<16x16xi8, #tpu.memory_space<vmem>>, vector<16x16xi8>
    %8 = arith.extsi %7 : vector<16x16xi8> to vector<16x16xi32>
    %c0_i32 = arith.constant 0 : i32
    %9 = vector.broadcast %c0_i32 : i32 to vector<16x16xi32>
    %10 = arith.cmpi sgt, %8, %9 : vector<16x16xi32>
    %11 = vector.extract_strided_slice %4 {offsets = [0, 0], sizes = [16, 1], strides = [1, 1]} : vector<16x8xf32> to vector<16x1xf32>
    %12 = vector.extract_strided_slice %6 {offsets = [0, 0], sizes = [1, 16], strides = [1, 1]} : vector<4x16xf32> to vector<1x16xf32>
    %13 = vector.broadcast %11 : vector<16x1xf32> to vector<16x16xf32>
    %14 = vector.broadcast %12 : vector<1x16xf32> to vector<16x16xf32>
    %15 = arith.addf %13, %14 : vector<16x16xf32>
    %cst_8 = arith.constant 0.000000e+00 : f32
    %16 = vector.broadcast %cst_8 : f32 to vector<16x16xf32>
    %17 = arith.cmpf ogt, %15, %16 : vector<16x16xf32>
    %cst_9 = arith.constant 2.000000e-01 : f32
    %18 = vector.broadcast %cst_9 : f32 to vector<16x16xf32>
    %19 = arith.mulf %18, %15 : vector<16x16xf32>
    %20 = arith.select %17, %15, %19 : vector<16x16xi1>, vector<16x16xf32>
    %cst_10 = arith.constant -1.000000e+30 : f32
    %21 = vector.broadcast %cst_10 : f32 to vector<16x16xf32>
    %22 = arith.select %10, %20, %21 : vector<16x16xi1>, vector<16x16xf32>
    %cst_11 = arith.constant dense<0xFF800000> : vector<16xf32>
    %23 = vector.multi_reduction <maximumf>, %22, %cst_11 [1] : vector<16x16xf32> to vector<16xf32>
    %24 = vector.shape_cast %23 : vector<16xf32> to vector<16x1xf32>
    %25 = vector.broadcast %24 : vector<16x1xf32> to vector<16x16xf32>
    %26 = arith.subf %22, %25 : vector<16x16xf32>
    %27 = math.exp %26 : vector<16x16xf32>
    %cst_12 = arith.constant dense<0.000000e+00> : vector<16xf32>
    %28 = vector.multi_reduction <add>, %27, %cst_12 [1] : vector<16x16xf32> to vector<16xf32>
    %29 = vector.shape_cast %28 : vector<16xf32> to vector<16x1xf32>
    %30 = tpu.reciprocal %29 {approx = true} : vector<16x1xf32> -> vector<16x1xf32>
    %31 = arith.mulf %29, %30 : vector<16x1xf32>
    %cst_13 = arith.constant 2.000000e+00 : f32
    %32 = vector.broadcast %cst_13 : f32 to vector<16x1xf32>
    %33 = arith.subf %32, %31 : vector<16x1xf32>
    %34 = arith.mulf %30, %33 : vector<16x1xf32>
    %35 = arith.mulf %29, %34 : vector<16x1xf32>
    %cst_14 = arith.constant 2.000000e+00 : f32
    %36 = vector.broadcast %cst_14 : f32 to vector<16x1xf32>
    %37 = arith.subf %36, %35 : vector<16x1xf32>
    %38 = arith.mulf %34, %37 : vector<16x1xf32>
    %39 = vector.extract_strided_slice %2 {offsets = [0, 0], sizes = [16, 32], strides = [1, 1]} : vector<16x128xf32> to vector<16x32xf32>
    %cst_15 = arith.constant dense<0.000000e+00> : vector<16x32xf32>
    %40 = tpu.matmul %27, %39, %cst_15 {dimension_numbers = #tpu.dot_dimension_numbers<[1], [0], [0], [1], [0, 0, 1, 1], [], []>} : vector<16x16xf32>, vector<16x32xf32>, vector<16x32xf32> -> vector<16x32xf32>
    %41 = vector.broadcast %38 : vector<16x1xf32> to vector<16x32xf32>
    %42 = arith.mulf %40, %41 : vector<16x32xf32>
    %43 = vector.extract_strided_slice %4 {offsets = [0, 1], sizes = [16, 1], strides = [1, 1]} : vector<16x8xf32> to vector<16x1xf32>
    %44 = vector.extract_strided_slice %6 {offsets = [1, 0], sizes = [1, 16], strides = [1, 1]} : vector<4x16xf32> to vector<1x16xf32>
    %45 = vector.broadcast %43 : vector<16x1xf32> to vector<16x16xf32>
    %46 = vector.broadcast %44 : vector<1x16xf32> to vector<16x16xf32>
    %47 = arith.addf %45, %46 : vector<16x16xf32>
    %cst_16 = arith.constant 0.000000e+00 : f32
    %48 = vector.broadcast %cst_16 : f32 to vector<16x16xf32>
    %49 = arith.cmpf ogt, %47, %48 : vector<16x16xf32>
    %cst_17 = arith.constant 2.000000e-01 : f32
    %50 = vector.broadcast %cst_17 : f32 to vector<16x16xf32>
    %51 = arith.mulf %50, %47 : vector<16x16xf32>
    %52 = arith.select %49, %47, %51 : vector<16x16xi1>, vector<16x16xf32>
    %cst_18 = arith.constant -1.000000e+30 : f32
    %53 = vector.broadcast %cst_18 : f32 to vector<16x16xf32>
    %54 = arith.select %10, %52, %53 : vector<16x16xi1>, vector<16x16xf32>
    %cst_19 = arith.constant dense<0xFF800000> : vector<16xf32>
    %55 = vector.multi_reduction <maximumf>, %54, %cst_19 [1] : vector<16x16xf32> to vector<16xf32>
    %56 = vector.shape_cast %55 : vector<16xf32> to vector<16x1xf32>
    %57 = vector.broadcast %56 : vector<16x1xf32> to vector<16x16xf32>
    %58 = arith.subf %54, %57 : vector<16x16xf32>
    %59 = math.exp %58 : vector<16x16xf32>
    %cst_20 = arith.constant dense<0.000000e+00> : vector<16xf32>
    %60 = vector.multi_reduction <add>, %59, %cst_20 [1] : vector<16x16xf32> to vector<16xf32>
    %61 = vector.shape_cast %60 : vector<16xf32> to vector<16x1xf32>
    %62 = tpu.reciprocal %61 {approx = true} : vector<16x1xf32> -> vector<16x1xf32>
    %63 = arith.mulf %61, %62 : vector<16x1xf32>
    %cst_21 = arith.constant 2.000000e+00 : f32
    %64 = vector.broadcast %cst_21 : f32 to vector<16x1xf32>
    %65 = arith.subf %64, %63 : vector<16x1xf32>
    %66 = arith.mulf %62, %65 : vector<16x1xf32>
    %67 = arith.mulf %61, %66 : vector<16x1xf32>
    %cst_22 = arith.constant 2.000000e+00 : f32
    %68 = vector.broadcast %cst_22 : f32 to vector<16x1xf32>
    %69 = arith.subf %68, %67 : vector<16x1xf32>
    %70 = arith.mulf %66, %69 : vector<16x1xf32>
    %71 = vector.extract_strided_slice %2 {offsets = [0, 32], sizes = [16, 32], strides = [1, 1]} : vector<16x128xf32> to vector<16x32xf32>
    %cst_23 = arith.constant dense<0.000000e+00> : vector<16x32xf32>
    %72 = tpu.matmul %59, %71, %cst_23 {dimension_numbers = #tpu.dot_dimension_numbers<[1], [0], [0], [1], [0, 0, 1, 1], [], []>} : vector<16x16xf32>, vector<16x32xf32>, vector<16x32xf32> -> vector<16x32xf32>
    %73 = vector.broadcast %70 : vector<16x1xf32> to vector<16x32xf32>
    %74 = arith.mulf %72, %73 : vector<16x32xf32>
    %75 = vector.extract_strided_slice %4 {offsets = [0, 2], sizes = [16, 1], strides = [1, 1]} : vector<16x8xf32> to vector<16x1xf32>
    %76 = vector.extract_strided_slice %6 {offsets = [2, 0], sizes = [1, 16], strides = [1, 1]} : vector<4x16xf32> to vector<1x16xf32>
    %77 = vector.broadcast %75 : vector<16x1xf32> to vector<16x16xf32>
    %78 = vector.broadcast %76 : vector<1x16xf32> to vector<16x16xf32>
    %79 = arith.addf %77, %78 : vector<16x16xf32>
    %cst_24 = arith.constant 0.000000e+00 : f32
    %80 = vector.broadcast %cst_24 : f32 to vector<16x16xf32>
    %81 = arith.cmpf ogt, %79, %80 : vector<16x16xf32>
    %cst_25 = arith.constant 2.000000e-01 : f32
    %82 = vector.broadcast %cst_25 : f32 to vector<16x16xf32>
    %83 = arith.mulf %82, %79 : vector<16x16xf32>
    %84 = arith.select %81, %79, %83 : vector<16x16xi1>, vector<16x16xf32>
    %cst_26 = arith.constant -1.000000e+30 : f32
    %85 = vector.broadcast %cst_26 : f32 to vector<16x16xf32>
    %86 = arith.select %10, %84, %85 : vector<16x16xi1>, vector<16x16xf32>
    %cst_27 = arith.constant dense<0xFF800000> : vector<16xf32>
    %87 = vector.multi_reduction <maximumf>, %86, %cst_27 [1] : vector<16x16xf32> to vector<16xf32>
    %88 = vector.shape_cast %87 : vector<16xf32> to vector<16x1xf32>
    %89 = vector.broadcast %88 : vector<16x1xf32> to vector<16x16xf32>
    %90 = arith.subf %86, %89 : vector<16x16xf32>
    %91 = math.exp %90 : vector<16x16xf32>
    %cst_28 = arith.constant dense<0.000000e+00> : vector<16xf32>
    %92 = vector.multi_reduction <add>, %91, %cst_28 [1] : vector<16x16xf32> to vector<16xf32>
    %93 = vector.shape_cast %92 : vector<16xf32> to vector<16x1xf32>
    %94 = tpu.reciprocal %93 {approx = true} : vector<16x1xf32> -> vector<16x1xf32>
    %95 = arith.mulf %93, %94 : vector<16x1xf32>
    %cst_29 = arith.constant 2.000000e+00 : f32
    %96 = vector.broadcast %cst_29 : f32 to vector<16x1xf32>
    %97 = arith.subf %96, %95 : vector<16x1xf32>
    %98 = arith.mulf %94, %97 : vector<16x1xf32>
    %99 = arith.mulf %93, %98 : vector<16x1xf32>
    %cst_30 = arith.constant 2.000000e+00 : f32
    %100 = vector.broadcast %cst_30 : f32 to vector<16x1xf32>
    %101 = arith.subf %100, %99 : vector<16x1xf32>
    %102 = arith.mulf %98, %101 : vector<16x1xf32>
    %103 = vector.extract_strided_slice %2 {offsets = [0, 64], sizes = [16, 32], strides = [1, 1]} : vector<16x128xf32> to vector<16x32xf32>
    %cst_31 = arith.constant dense<0.000000e+00> : vector<16x32xf32>
    %104 = tpu.matmul %91, %103, %cst_31 {dimension_numbers = #tpu.dot_dimension_numbers<[1], [0], [0], [1], [0, 0, 1, 1], [], []>} : vector<16x16xf32>, vector<16x32xf32>, vector<16x32xf32> -> vector<16x32xf32>
    %105 = vector.broadcast %102 : vector<16x1xf32> to vector<16x32xf32>
    %106 = arith.mulf %104, %105 : vector<16x32xf32>
    %107 = vector.extract_strided_slice %4 {offsets = [0, 3], sizes = [16, 1], strides = [1, 1]} : vector<16x8xf32> to vector<16x1xf32>
    %108 = vector.extract_strided_slice %6 {offsets = [3, 0], sizes = [1, 16], strides = [1, 1]} : vector<4x16xf32> to vector<1x16xf32>
    %109 = vector.broadcast %107 : vector<16x1xf32> to vector<16x16xf32>
    %110 = vector.broadcast %108 : vector<1x16xf32> to vector<16x16xf32>
    %111 = arith.addf %109, %110 : vector<16x16xf32>
    %cst_32 = arith.constant 0.000000e+00 : f32
    %112 = vector.broadcast %cst_32 : f32 to vector<16x16xf32>
    %113 = arith.cmpf ogt, %111, %112 : vector<16x16xf32>
    %cst_33 = arith.constant 2.000000e-01 : f32
    %114 = vector.broadcast %cst_33 : f32 to vector<16x16xf32>
    %115 = arith.mulf %114, %111 : vector<16x16xf32>
    %116 = arith.select %113, %111, %115 : vector<16x16xi1>, vector<16x16xf32>
    %cst_34 = arith.constant -1.000000e+30 : f32
    %117 = vector.broadcast %cst_34 : f32 to vector<16x16xf32>
    %118 = arith.select %10, %116, %117 : vector<16x16xi1>, vector<16x16xf32>
    %cst_35 = arith.constant dense<0xFF800000> : vector<16xf32>
    %119 = vector.multi_reduction <maximumf>, %118, %cst_35 [1] : vector<16x16xf32> to vector<16xf32>
    %120 = vector.shape_cast %119 : vector<16xf32> to vector<16x1xf32>
    %121 = vector.broadcast %120 : vector<16x1xf32> to vector<16x16xf32>
    %122 = arith.subf %118, %121 : vector<16x16xf32>
    %123 = math.exp %122 : vector<16x16xf32>
    %cst_36 = arith.constant dense<0.000000e+00> : vector<16xf32>
    %124 = vector.multi_reduction <add>, %123, %cst_36 [1] : vector<16x16xf32> to vector<16xf32>
    %125 = vector.shape_cast %124 : vector<16xf32> to vector<16x1xf32>
    %126 = tpu.reciprocal %125 {approx = true} : vector<16x1xf32> -> vector<16x1xf32>
    %127 = arith.mulf %125, %126 : vector<16x1xf32>
    %cst_37 = arith.constant 2.000000e+00 : f32
    %128 = vector.broadcast %cst_37 : f32 to vector<16x1xf32>
    %129 = arith.subf %128, %127 : vector<16x1xf32>
    %130 = arith.mulf %126, %129 : vector<16x1xf32>
    %131 = arith.mulf %125, %130 : vector<16x1xf32>
    %cst_38 = arith.constant 2.000000e+00 : f32
    %132 = vector.broadcast %cst_38 : f32 to vector<16x1xf32>
    %133 = arith.subf %132, %131 : vector<16x1xf32>
    %134 = arith.mulf %130, %133 : vector<16x1xf32>
    %135 = vector.extract_strided_slice %2 {offsets = [0, 96], sizes = [16, 32], strides = [1, 1]} : vector<16x128xf32> to vector<16x32xf32>
    %cst_39 = arith.constant dense<0.000000e+00> : vector<16x32xf32>
    %136 = tpu.matmul %123, %135, %cst_39 {dimension_numbers = #tpu.dot_dimension_numbers<[1], [0], [0], [1], [0, 0, 1, 1], [], []>} : vector<16x16xf32>, vector<16x32xf32>, vector<16x32xf32> -> vector<16x32xf32>
    %137 = vector.broadcast %134 : vector<16x1xf32> to vector<16x32xf32>
    %138 = arith.mulf %136, %137 : vector<16x32xf32>
    %139 = tpu.concatenate %42, %74, %106, %138 in 1 : vector<16x32xf32>, vector<16x32xf32>, vector<16x32xf32>, vector<16x32xf32> -> vector<16x128xf32>
    %c0_40 = arith.constant 0 : index
    %c0_41 = arith.constant 0 : index
    %140 = vector.load %arg4[%c0_40, %c0_41] : memref<1x128xf32, #tpu.memory_space<vmem>>, vector<1x128xf32>
    %141 = vector.broadcast %140 : vector<1x128xf32> to vector<16x128xf32>
    %142 = arith.addf %139, %141 : vector<16x128xf32>
    %c0_42 = arith.constant 0 : index
    %c0_43 = arith.constant 0 : index
    %143 = vector.load %arg5[%c0_42, %c0_43] : memref<16x128xf32, #tpu.memory_space<vmem>>, vector<16x128xf32>
    tpu.vector_store %arg5[%c0_42, %c0_43], %142 {strides = array<i32>} : memref<16x128xf32, #tpu.memory_space<vmem>>, vector<16x128xf32>,
    return
  }
}

</mosaic_0001>

<bundles_post_ra>
// kernel: tpu_custom_call.1
= control target key start
LH: loop header
LB: loop body
LE: loop exit
PB: predicated region body
PF: predicated region fallthrough
CT: control target
= control target key end

     0   :  { %vm25_vm0 = vcmask 130048   ;;  %s1340_s0 = inlined_call_operand.vmem [shape: f32[16,16], index: 0, kind: input, shape index: {}]   ;;  %s1341_s1 = inlined_call_operand.vmem [shape: f32[16,128], index: 1, kind: input, shape index: {}]   ;;  %s1342_s2 = inlined_call_operand.vmem [shape: f32[128,8], index: 2, kind: input, shape index: {}]   ;;  %s1343_s3 = inlined_call_operand.vmem [shape: s8[16,16], index: 3, kind: input, shape index: {}]   ;;  %s1344_s4 = inlined_call_operand.vmem [shape: f32[1,128], index: 4, kind: input, shape index: {}]   ;;  %s1345_s5 = inlined_call_operand.hbm [shape: f32[16,128], index: 5, kind: output, shape index: {}]  }
   0x1   :  { %v23_v0 = vld [vmem:[%s1341_s1] sm:$0xff]  ;;  %v24_v1 = vld [vmem:[%s1341_s1 + $0x8] sm:$0xff]  ;;  %v109_v7 = vld [vmem:[%s1342_s2 + $0x10] sm:$0xff] }
   0x2   :  { %v21_v2 = vld [vmem:[%s1340_s0] sm:$0xff]  ;;  %v995_v3 = vpack.c.bf16 %v24_v1, %v23_v0  ;;  %v108_v5 = vld [vmem:[%s1342_s2 + $0x8] sm:$0xff]  ;;  %v110_v8 = vld [vmem:[%s1342_s2 + $0x18] sm:$0xff] }
   0x3   :  { %929 = vmatprep.mubr.msk.f32.mxu0 %vm25_vm0, %v21_v2  ;;  %v107_v4 = vld [vmem:[%s1342_s2] sm:$0xff]  ;;  %v1003_v9 = vpack.c.bf16 %v110_v8, %v109_v7  ;;  %v112_v11 = vld [vmem:[%s1342_s2 + $0x28] sm:$0xff] }
   0x4   :  { %v999_v6 = vpack.c.bf16 %v108_v5, %v107_v4  ;;  %996 = vmatprep.subr.bf16.mxu0 %v995_v3  ;;  %v111_v10 = vld [vmem:[%s1342_s2 + $0x20] sm:$0xff]  ;;  %v22_v12 = vld [vmem:[%s1340_s0 + $0x8] sm:$0xff] }
   0x5   :  { %998 = vmatpush3.bf16.msra.mxu0 %v995_v3  ;;  %v1007_v13 = vpack.c.bf16 %v112_v11, %v111_v10 }
   0x6   :  { %1000 = vmatprep.subr.bf16.mxu1 %v999_v6 }
   0x7   :  { %1002 = vmatpush3.bf16.msra.mxu1 %v999_v6 }
   0x8   :  { %1004 = vmatprep.subr.bf16.mxu1 %v1003_v9 }
   0x9   :  { %10 = vsyncpa [#allocation3], 0  ;;  %930 = vmatmul.mubr.msk.f32.vlgmr.msra.gmra.mrb[0].mxu0 %vm25_vm0, %v22_v12  ;;  %v113_v14 = vld [vmem:[%s1342_s2 + $0x30] sm:$0xff]  ;;  %v114_v15 = vld [vmem:[%s1342_s2 + $0x38] sm:$0xff]  ;;  %v1139_v29 = vmov 0   ;;  %v1140_v34 = vmov 2   ;;  %v252_v44 = vlaneseq }
   0xa   :  { %v1011_v16 = vpack.c.bf16 %v114_v15, %v113_v14  ;;  %v115_v17 = vld [vmem:[%s1342_s2 + $0x40] sm:$0xff]  ;;  %v116_v18 = vld [vmem:[%s1342_s2 + $0x48] sm:$0xff]  ;;  %v117_v20 = vld [vmem:[%s1342_s2 + $0x50] sm:$0xff]  ;;  %1059 = vset.pattern.permute.xlu1 %v1139_v29  ;;  %1061 = vset.pattern.permute.xlu0 %v1140_v34  ;;  %v1142_v37 = vmov 1   ;;  %v1143_v38 = vmov 3   ;;  %s1145_s7 = smov 32  }
   0xb   :  { %1006 = vmatpush3.bf16.msra.mxu1 %v1003_v9  ;;  %v1015_v19 = vpack.c.bf16 %v116_v18, %v115_v17  ;;  %v118_v21 = vld [vmem:[%s1342_s2 + $0x58] sm:$0xff]  ;;  %v119_v23 = vld [vmem:[%s1342_s2 + $0x60] sm:$0xff]  ;;  %v120_v24 = vld [vmem:[%s1342_s2 + $0x68] sm:$0xff]  ;;  %v253_v46 = vshrl.u32 %v252_v44, 7  ;;  %s1146_s8 = smov 64   ;;  %vm836_vm11 = vcmask 261120  }
   0xc   :  { %1008 = vmatprep.subr.bf16.mxu1 %v1007_v13  ;;  %v1019_v22 = vpack.c.bf16 %v118_v21, %v117_v20  ;;  %v1023_v25 = vpack.c.bf16 %v120_v24, %v119_v23  ;;  %v121_v26 = vld [vmem:[%s1342_s2 + $0x70] sm:$0xff]  ;;  %v122_v27 = vld [vmem:[%s1342_s2 + $0x78] sm:$0xff]  ;;  %s1141_s2 = smov 124   ;;  %v884_v50 = vld [vmem:[%s1343_s3] sm:$0xf]   ;;  %s1144_s3 = smov 96  }
   0xd   :  { %v1027_v28 = vpack.c.bf16 %v122_v27, %v121_v26  ;;  %v254_v49 = vsub.s32 0, %v253_v46  ;;  %v679_v51 = vsub.s32 3, %v253_v46  ;;  %v886_v54 = vunpack.c.1.s8 %v884_v50  ;;  %s1147_s11 = smov [#allocation2]  }
   0xe   :  { %v885_v55 = vunpack.c.0.s8 %v884_v50  ;;  %v391_v15 = vsub.s32 1, %v253_v46  ;;  %v536_v17 = vsub.s32 2, %v253_v46  ;;  %vm839_vm12 = vcmask 523264   ;;  %s861_s12 = sshll.u32 %s1147_s11, 4  ;;  %s862_s12 = int_to_ptr.vmem [resolvable:$true] %s861_s12 }
   0xf   :  { %1010 = vmatpush3.bf16.msra.mxu1 %v1007_v13  ;;  %vm1247_vm1 = vcmp.gt.s32.totalorder %v886_v54, 0  ;;  %vm842_vm13 = vcmask 785408   ;;  %s1115_s13 = scalar_lea.vmem %s862_s12, 256  ;;  %p1120_p1 = scmp.lt.s32.totalorder %s862_s12, %s862_s12 }
  0x10   :  { %1012 = vmatprep.subr.bf16.mxu1 %v1011_v16  ;;  %vm1251_vm2 = vcmp.gt.s32.totalorder %v885_v55, 0  ;;  %p1116_p0 = scmp.ne.s32.totalorder %s862_s12, %s1115_s13  ;;  %p1121_p2 = scmp.lt.s32.totalorder %s1115_s13, %s1115_s13 }
  0x12   :  { %p1122_p3 = por %p1121_p2, %p1120_p1 }
  0x13   :  { %1014 = vmatpush3.bf16.msra.mxu1 %v1011_v16 }
  0x14   :  { %1016 = vmatprep.subr.bf16.mxu1 %v1015_v19  ;;  %p1123_p4 = pnand %p1122_p3, %p1116_p0 }
  0x17   :  { %1018 = vmatpush3.bf16.msra.mxu1 %v1015_v19 }
  0x18   :  { %1020 = vmatprep.subr.bf16.mxu1 %v1019_v22 }
  0x1b   :  { %1022 = vmatpush3.bf16.msra.mxu1 %v1019_v22 }
  0x1c   :  { %1024 = vmatprep.subr.bf16.mxu1 %v1023_v25 }
  0x1f   :  { %1026 = vmatpush3.bf16.msra.mxu1 %v1023_v25 }
  0x20   :  { %1028 = vmatprep.subr.bf16.mxu1 %v1027_v28 }
  0x23   :  { %1030 = vmatpush3.bf16.msra.mxu1 %v1027_v28 }
  0xdc   :  { %v931_v30 = vpop.f32.mrb[0].mxu0 }
  0xdd   :  { %v98_v31 = vpop.f32.mrb[1].mxu0 }
  0xde   :  { %964 = vmatprep.mubr.f32.mxu1 %v98_v31  ;;  %v1031_v32 = vpack.c.bf16 %v931_v30, %v98_v31  ;;  %v1242_v33 = vpack.i.bf16 %v931_v30, %v98_v31 }
  0xdf   :  { %965 = vmatmul.mubr.f32.vlgmr.msra.gmra.mrb[0].mxu1 %v931_v30 }
  0xe0   :  { %1032 = vmatprep.subr.bf16.mxu0 %v1031_v32 }
  0xe1   :  { %1034 = vmatpush3.bf16.msra.mxu0 %v1031_v32 }
 0x1b2   :  { %v966_v35 = vpop.f32.mrb[0].mxu1 }
 0x1b3   :  { %249 = vperm.xlu1 %1059, %v966_v35   ;;  %v189_v36 = vpop.f32.mrb[1].mxu1 }
 0x1b4   :  { %200 = vrot.lane.b32.xlu0 %v189_v36, %s1141_s2 }
 0x1b7   :  { %1060 = vset.pattern.permute.xlu1 %v1142_v37 }
 0x1b8   :  { %386 = vperm.xlu1 %1060, %v966_v35   ;;  %202 = vrot.lane.b32.xlu0 %v966_v35, %s1141_s2 }
 0x1bc   :  { %1062 = vset.pattern.permute.xlu1 %v1143_v38  ;;  %531 = vperm.xlu0 %1061, %v966_v35  }
 0x1bd   :  { %674 = vperm.xlu1 %1062, %v966_v35  }
 0x1c0   :  { %1064 = vset.pattern.permute.xlu0 %v1142_v37 }
 0x1c1   :  { %1063 = vset.pattern.permute.xlu1 %v1139_v29  ;;  %382 = vperm.xlu0 %1064, %v189_v36  }
 0x1c2   :  { %245 = vperm.xlu1 %1063, %v189_v36  }
 0x1c6   :  { %1065 = vset.pattern.permute.xlu1 %v1140_v34 }
 0x1c7   :  { %527 = vperm.xlu1 %1065, %v189_v36  }
 0x1cb   :  { %1066 = vset.pattern.permute.xlu1 %v1143_v38 }
 0x1cc   :  { %670 = vperm.xlu1 %1066, %v189_v36  }
 0x226   :  { %v201_v39 = vpop.permute.xlu0 %200 }
 0x227   :  { %206 = vxpose.xlu0.b32.start [1/2] (short) (narrow) %v201_v39, 8 }
 0x22a   :  { %v203_v40 = vpop.permute.xlu0 %202 }
 0x22b   :  { %207 = vxpose.xlu0.b32.end [2/2] (short) (narrow) %v203_v40, 8 }
 0x232   :  { %v250_v41 = vpop.permute.xlu1 %249 }
 0x237   :  { %v387_v42 = vpop.permute.xlu1 %386 }
 0x23b   :  { %v532_v45 = vpop.permute.xlu0 %531 }
 0x23c   :  { %v675_v43 = vpop.permute.xlu1 %674 }
 0x240   :  { %v383_v48 = vpop.permute.xlu0 %382 }
 0x241   :  { %v246_v47 = vpop.permute.xlu1 %245 }
 0x246   :  { %v528_v52 = vpop.permute.xlu1 %527 }
 0x24b   :  { %v671_v0 = vpop.permute.xlu1 %670 }
 0x254   :  { %1082 = vset.pattern.permute.xlu0 %v1143_v38 }
 0x2a7   :  { %v222_v53 = vpop.trf.xlu0 }
 0x2a8   :  { %v255_v56 = vrot.slane %v222_v53, %v254_v49  ;;  %v680_v57 = vrot.slane %v222_v53, %v679_v51  ;;  %v392_v16 = vrot.slane %v222_v53, %v391_v15  ;;  %v537_v19 = vrot.slane %v222_v53, %v536_v17 }
 0x2aa   :  { %v257_v58 = vadd.f32 %v255_v56, %v250_v41  ;;  %v256_v59 = vadd.f32 %v255_v56, %v246_v47  ;;  %v681_v3 = vadd.f32 %v680_v57, %v671_v0  ;;  %v682_v4 = vadd.f32 %v680_v57, %v675_v43 }
 0x2ab   :  { %v393_v18 = vadd.f32 %v392_v16, %v383_v48  ;;  %v394_v21 = vadd.f32 %v392_v16, %v387_v42  ;;  %v538_v24 = vadd.f32 %v537_v19, %v528_v52  ;;  %v539_v28 = vadd.f32 %v537_v19, %v532_v45 }
 0x2ac   :  { %vm259_vm3 = vcmp.gt.f32.partialorder %v257_v58, 0.0  ;;  %v261_v62 = vmul.f32 0.2, %v257_v58  ;;  %vm258_vm4 = vcmp.gt.f32.partialorder %v256_v59, 0.0  ;;  %v260_v63 = vmul.f32 0.2, %v256_v59 }
 0x2ad   :  { %vm683_vm5 = vcmp.gt.f32.partialorder %v681_v3, 0.0  ;;  %vm684_vm6 = vcmp.gt.f32.partialorder %v682_v4, 0.0  ;;  %v685_v9 = vmul.f32 0.2, %v681_v3  ;;  %v686_v10 = vmul.f32 0.2, %v682_v4 }
 0x2ae   :  { %v263_v1 = vsel %vm259_vm3, %v257_v58, %v261_v62  ;;  %v262_v2 = vsel %vm258_vm4, %v256_v59, %v260_v63  ;;  %v397_v20 = vmul.f32 0.2, %v393_v18  ;;  %vm395_vm7 = vcmp.gt.f32.partialorder %v393_v18, 0.0 }
 0x2af   :  { %v265_v5 = vsel %vm1247_vm1, %v263_v1, -1e+30  ;;  %v264_v6 = vsel %vm1251_vm2, %v262_v2, -1e+30  ;;  %v687_v11 = vsel %vm683_vm5, %v681_v3, %v685_v9  ;;  %v688_v12 = vsel %vm684_vm6, %v682_v4, %v686_v10 }
 0x2b0   :  { %v269_v7 = vsel %vm25_vm0, %v265_v5, -inf  ;;  %v266_v8 = vsel %vm25_vm0, %v264_v6, -inf  ;;  %v1263_v13 = vsel %vm1251_vm2, %v687_v11, -1e+30  ;;  %v1267_v14 = vsel %vm1247_vm1, %v688_v12, -1e+30 }
 0x2b1   :  { %270 = vmax.xlane.f32.xlu0 %v269_v7  ;;  %267 = vmax.xlane.f32.xlu1 %v266_v8  ;;  %v399_v22 = vsel %vm395_vm7, %v393_v18, %v397_v20  ;;  %v398_v23 = vmul.f32 0.2, %v394_v21  ;;  %vm396_vm8 = vcmp.gt.f32.partialorder %v394_v21, 0.0  ;;  %v542_v27 = vmul.f32 0.2, %v538_v24 }
 0x2b2   :  { %v401_v25 = vsel %vm1251_vm2, %v399_v22, -1e+30  ;;  %vm540_vm9 = vcmp.gt.f32.partialorder %v538_v24, 0.0  ;;  %v543_v32 = vmul.f32 0.2, %v539_v28  ;;  %vm541_vm10 = vcmp.gt.f32.partialorder %v539_v28, 0.0 }
 0x2b3   :  { %v400_v26 = vsel %vm396_vm8, %v394_v21, %v398_v23  ;;  %v403_v29 = vsel %vm25_vm0, %v401_v25, -inf  ;;  %v544_v31 = vsel %vm540_vm9, %v538_v24, %v542_v27  ;;  %v691_v40 = vsel %vm25_vm0, %v1263_v13, -inf }
 0x2b4   :  { %v402_v30 = vsel %vm1247_vm1, %v400_v26, -1e+30  ;;  %v546_v35 = vsel %vm1251_vm2, %v544_v31, -1e+30  ;;  %v545_v36 = vsel %vm541_vm10, %v539_v28, %v543_v32  ;;  %v694_v41 = vsel %vm25_vm0, %v1267_v14, -inf }
 0x2b5   :  { %v406_v34 = vsel %vm25_vm0, %v402_v30, -inf  ;;  %v548_v37 = vsel %vm25_vm0, %v546_v35, -inf  ;;  %v547_v38 = vsel %vm1247_vm1, %v545_v36, -1e+30 }
 0x2b6   :  { %v551_v39 = vsel %vm25_vm0, %v547_v38, -inf }
 0x2c2   :  { %1068 = vrot.lane.b32.xlu1 %v1242_v33, %s1144_s3 }
 0x2c7   :  { %1078 = vrot.lane.b32.xlu0 %v1242_v33, %s1145_s7 }
 0x2e6   :  { %404 = vmax.xlane.f32.xlu1 %v403_v29 }
 0x2ea   :  { %407 = vmax.xlane.f32.xlu1 %v406_v34 }
 0x2ee   :  { %549 = vmax.xlane.f32.xlu1 %v548_v37 }
 0x2f2   :  { %552 = vmax.xlane.f32.xlu1 %v551_v39 }
 0x2f6   :  { %692 = vmax.xlane.f32.xlu1 %v691_v40 }
 0x2fa   :  { %695 = vmax.xlane.f32.xlu1 %v694_v41 }
 0x30b   :  { %1073 = vrot.lane.b32.xlu1 %v1242_v33, %s1146_s8 }
 0x33e   :  { %v271_v42 = vpop.xlane.xlu0 %270  ;;  %v268_v43 = vpop.xlane.xlu1 %267 }
 0x33f   :  { %v273_v44 = vsub.f32 %v265_v5, %v271_v42  ;;  %v272_v45 = vsub.f32 %v264_v6, %v268_v43 }
 0x341   :  { %v276_v46 = vmul.f32 1.442695, %v273_v44  ;;  %v274_v47 = vmul.f32 1.442695, %v272_v45 }
 0x342   :  { %v1069_v48 = vpop.permute.xlu1 %1068  ;;  %v1079_v9 = vpop.permute.xlu0 %1078 }
 0x343   :  { %1083 = vpow2.f32 %v276_v46  ;;  %v1071_v49 = vunpack.i.h.bf16 %v1069_v48  ;;  %v1070_v50 = vunpack.i.l.bf16 %v1069_v48  ;;  %v1081_v15 = vunpack.i.h.bf16 %v1079_v9 }
 0x344   :  { %1085 = vpow2.f32 %v274_v47  ;;  %v1080_v18 = vunpack.i.l.bf16 %v1079_v9 }
 0x345   :  { %v1035_v51 = vpack.c.bf16 %v1071_v49, %v1070_v50 }
 0x346   :  { %v1043_v23 = vpack.c.bf16 %v1081_v15, %v1080_v18 }
 0x347   :  { %1036 = vmatprep.subr.bf16.mxu0 %v1035_v51 }
 0x34d   :  { %v1291_v52 = vpop.eup %1083 }
 0x34e   :  { %v1086_v53 = vpop.eup %1085  ;;  %v281_v28 = vsel %vm25_vm0, %v1291_v52, 0.0 }
 0x34f   :  { %971 = vmatprep.mubr.msk.f32.mxu0 %vm25_vm0, %v1086_v53 }
 0x350   :  { %972 = vmatmul.mubr.msk.f32.vlgmr.msra.gmra.mrb[2].mxu0 %vm25_vm0, %v1291_v52 }
 0x351   :  { %1038 = vmatpush3.bf16.msra.mxu0 %v1035_v51 }
 0x373   :  { %v405_v33 = vpop.xlane.xlu1 %404 }
 0x374   :  { %v409_v54 = vsub.f32 %v401_v25, %v405_v33 }
 0x376   :  { %v411_v55 = vmul.f32 1.442695, %v409_v54 }
 0x377   :  { %v408_v56 = vpop.xlane.xlu1 %407 }
 0x378   :  { %1087 = vpow2.f32 %v411_v55  ;;  %v410_v57 = vsub.f32 %v402_v30, %v408_v56 }
 0x37a   :  { %v413_v58 = vmul.f32 1.442695, %v410_v57 }
 0x37b   :  { %v550_v59 = vpop.xlane.xlu1 %549 }
 0x37c   :  { %1089 = vpow2.f32 %v413_v58  ;;  %v554_v60 = vsub.f32 %v546_v35, %v550_v59 }
 0x37e   :  { %v556_v61 = vmul.f32 1.442695, %v554_v60 }
 0x37f   :  { %v553_v62 = vpop.xlane.xlu1 %552 }
 0x380   :  { %1091 = vpow2.f32 %v556_v61  ;;  %v555_v63 = vsub.f32 %v547_v38, %v553_v62 }
 0x382   :  { %v1088_v0 = vpop.eup %1087  ;;  %v558_v1 = vmul.f32 1.442695, %v555_v63 }
 0x383   :  { %978 = vmatprep.mubr.msk.f32.mxu0 %vm25_vm0, %v1088_v0  ;;  %v693_v2 = vpop.xlane.xlu1 %692  ;;  %v415_v3 = vsel %vm25_vm0, %v1088_v0, 0.0 }
 0x384   :  { %1093 = vpow2.f32 %v558_v1  ;;  %v697_v4 = vsub.f32 %v1263_v13, %v693_v2  ;;  %416 = vadd.xlane.f32.xlu1 %v415_v3  ;;  %v278_v13 = vsel %vm25_vm0, %v1086_v53, 0.0 }
 0x386   :  { %v1090_v5 = vpop.eup %1089  ;;  %v699_v6 = vmul.f32 1.442695, %v697_v4 }
 0x387   :  { %v696_v7 = vpop.xlane.xlu1 %695  ;;  %979 = vmatmul.mubr.msk.f32.vlgmr.msra.gmra.mrb[4].mxu0 %vm25_vm0, %v1090_v5  ;;  %v418_v8 = vsel %vm25_vm0, %v1090_v5, 0.0 }
 0x388   :  { %1095 = vpow2.f32 %v699_v6  ;;  %v698_v10 = vsub.f32 %v1267_v14, %v696_v7  ;;  %419 = vadd.xlane.f32.xlu0 %v418_v8 }
 0x38a   :  { %v1092_v11 = vpop.eup %1091  ;;  %v701_v12 = vmul.f32 1.442695, %v698_v10 }
 0x38b   :  { %v1074_v16 = vpop.permute.xlu1 %1073  ;;  %985 = vmatprep.mubr.msk.f32.mxu0 %vm25_vm0, %v1092_v11  ;;  %v560_v17 = vsel %vm25_vm0, %v1092_v11, 0.0 }
 0x38c   :  { %1097 = vpow2.f32 %v701_v12  ;;  %v1076_v19 = vunpack.i.h.bf16 %v1074_v16  ;;  %v1075_v20 = vunpack.i.l.bf16 %v1074_v16  ;;  %279 = vadd.xlane.f32.xlu0 %v278_v13  ;;  %561 = vadd.xlane.f32.xlu1 %v560_v17 }
 0x38e   :  { %v1094_v21 = vpop.eup %1093  ;;  %v1039_v22 = vpack.c.bf16 %v1076_v19, %v1075_v20 }
 0x38f   :  { %v563_v14 = vsel %vm25_vm0, %v1094_v21, 0.0 }
 0x390   :  { %564 = vadd.xlane.f32.xlu1 %v563_v14  ;;  %1040 = vmatprep.subr.bf16.mxu0 %v1039_v22 }
 0x391   :  { %1042 = vmatpush3.bf16.msra.mxu0 %v1039_v22 }
 0x392   :  { %v1096_v24 = vpop.eup %1095  ;;  %1044 = vmatprep.subr.bf16.mxu0 %v1043_v23 }
 0x393   :  { %v703_v25 = vsel %vm25_vm0, %v1096_v24, 0.0 }
 0x394   :  { %704 = vadd.xlane.f32.xlu1 %v703_v25  ;;  %986 = vmatmul.mubr.msk.f32.vlgmr.msra.gmra.mrb[6].mxu0 %vm25_vm0, %v1094_v21 }
 0x395   :  { %1046 = vmatpush3.bf16.msra.mxu0 %v1043_v23  ;;  %992 = vmatprep.mubr.msk.f32.mxu0 %vm25_vm0, %v1096_v24 }
 0x396   :  { %v1098_v26 = vpop.eup %1097 }
 0x397   :  { %v706_v27 = vsel %vm25_vm0, %v1098_v26, 0.0 }
 0x398   :  { %707 = vadd.xlane.f32.xlu1 %v706_v27  ;;  %993 = vmatmul.mubr.msk.f32.vlgmr.msra.gmra.mrb[8].mxu0 %vm25_vm0, %v1098_v26 }
 0x39c   :  { %282 = vadd.xlane.f32.xlu1 %v281_v28 }
 0x411   :  { %v417_v31 = vpop.xlane.xlu1 %416 }
 0x415   :  { %v420_v34 = vpop.xlane.xlu0 %419 }
 0x416   :  { %1099 = vrcp.f32 %v420_v34 }
 0x417   :  { %1101 = vrcp.f32 %v417_v31 }
 0x419   :  { %v562_v32 = vpop.xlane.xlu1 %561  ;;  %v280_v28 = vpop.xlane.xlu0 %279 }
 0x41d   :  { %v565_v35 = vpop.xlane.xlu1 %564 }
 0x41e   :  { %1103 = vrcp.f32 %v565_v35 }
 0x41f   :  { %1105 = vrcp.f32 %v562_v32 }
 0x420   :  { %v1100_v37 = vpop.eup %1099 }
 0x421   :  { %v705_v36 = vpop.xlane.xlu1 %704  ;;  %v1102_v38 = vpop.eup %1101  ;;  %v424_v39 = vmul.f32 %v1100_v37, %v420_v34 }
 0x422   :  { %v423_v40 = vmul.f32 %v1102_v38, %v417_v31 }
 0x423   :  { %v1313_v29 = vpop.f32.mrb[2].mxu0  ;;  %v426_v42 = vsub.f32 2.0, %v424_v39 }
 0x424   :  { %v1315_v30 = vpop.f32.mrb[3].mxu0  ;;  %v425_v43 = vsub.f32 2.0, %v423_v40 }
 0x425   :  { %v708_v41 = vpop.xlane.xlu1 %707  ;;  %v428_v44 = vmul.f32 %v1100_v37, %v426_v42 }
 0x426   :  { %1107 = vrcp.f32 %v708_v41  ;;  %v427_v45 = vmul.f32 %v1102_v38, %v425_v43 }
 0x427   :  { %1109 = vrcp.f32 %v705_v36  ;;  %v430_v48 = vmul.f32 %v428_v44, %v420_v34 }
 0x428   :  { %v1104_v46 = vpop.eup %1103  ;;  %v429_v49 = vmul.f32 %v427_v45, %v417_v31 }
 0x429   :  { %v1106_v47 = vpop.eup %1105  ;;  %v569_v50 = vmul.f32 %v1104_v46, %v565_v35  ;;  %v432_v33 = vsub.f32 2.0, %v430_v48  ;;  %v283_v27 = vpop.xlane.xlu1 %282 }
 0x42a   :  { %v568_v52 = vmul.f32 %v1106_v47, %v562_v32  ;;  %v431_v54 = vsub.f32 2.0, %v429_v49  ;;  %1111 = vrcp.f32 %v283_v27 }
 0x42b   :  { %v571_v55 = vsub.f32 2.0, %v569_v50  ;;  %v434_v59 = vmul.f32 %v432_v33, %v428_v44  ;;  %1113 = vrcp.f32 %v280_v28 }
 0x42c   :  { %v570_v57 = vsub.f32 2.0, %v568_v52  ;;  %v433_v63 = vmul.f32 %v431_v54, %v427_v45 }
 0x42d   :  { %v573_v60 = vmul.f32 %v1104_v46, %v571_v55 }
 0x42e   :  { %v572_v0 = vmul.f32 %v1106_v47, %v570_v57 }
 0x42f   :  { %v575_v5 = vmul.f32 %v573_v60, %v565_v35 }
 0x430   :  { %v1108_v51 = vpop.eup %1107  ;;  %v574_v7 = vmul.f32 %v572_v0, %v562_v32 }
 0x431   :  { %v1110_v53 = vpop.eup %1109  ;;  %v712_v56 = vmul.f32 %v1108_v51, %v708_v41  ;;  %v577_v9 = vsub.f32 2.0, %v575_v5 }
 0x432   :  { %v711_v58 = vmul.f32 %v1110_v53, %v705_v36  ;;  %v576_v11 = vsub.f32 2.0, %v574_v7 }
 0x433   :  { %v714_v61 = vsub.f32 2.0, %v712_v56  ;;  %v579_v16 = vmul.f32 %v577_v9, %v573_v60 }
 0x434   :  { %v713_v1 = vsub.f32 2.0, %v711_v58  ;;  %v578_v18 = vmul.f32 %v576_v11, %v572_v0  ;;  %v1112_v31 = vpop.eup %1111 }
 0x435   :  { %v716_v6 = vmul.f32 %v1108_v51, %v714_v61  ;;  %v1114_v32 = vpop.eup %1113  ;;  %v287_v34 = vmul.f32 %v1112_v31, %v283_v27 }
 0x436   :  { %v715_v8 = vmul.f32 %v1110_v53, %v713_v1  ;;  %v286_v35 = vmul.f32 %v1114_v32, %v280_v28  ;;  %v882_v53 = vld [vmem:[%s1344_s4] ss:$0 sm:$0xff] }
 0x437   :  { %v718_v10 = vmul.f32 %v716_v6, %v708_v41 }
 0x438   :  { %v717_v12 = vmul.f32 %v715_v8, %v705_v36  ;;  %v289_v36 = vsub.f32 2.0, %v287_v34  ;;  %v288_v37 = vsub.f32 2.0, %v286_v35 }
 0x439   :  { %v720_v15 = vsub.f32 2.0, %v718_v10 }
 0x43a   :  { %v719_v13 = vsub.f32 2.0, %v717_v12  ;;  %v291_v38 = vmul.f32 %v1112_v31, %v289_v36  ;;  %v290_v39 = vmul.f32 %v1114_v32, %v288_v37 }
 0x43b   :  { %v722_v22 = vmul.f32 %v720_v15, %v716_v6 }
 0x43c   :  { %v721_v23 = vmul.f32 %v719_v13, %v715_v8  ;;  %v293_v40 = vmul.f32 %v291_v38, %v283_v27  ;;  %v292_v41 = vmul.f32 %v290_v39, %v280_v28 }
 0x43e   :  { %v295_v42 = vsub.f32 2.0, %v293_v40  ;;  %v294_v43 = vsub.f32 2.0, %v292_v41 }
 0x440   :  { %v297_v45 = vmul.f32 %v295_v42, %v291_v38  ;;  %v296_v47 = vmul.f32 %v294_v43, %v290_v39 }
 0x442   :  { %v380_v49 = vmul.f32 %v1313_v29, %v297_v45  ;;  %v379_v51 = vmul.f32 %v1315_v30, %v296_v47 }
 0x45a   :  { %v980_v62 = vpop.f32.mrb[4].mxu0 }
 0x45b   :  { %v525_v2 = vmul.f32 %v980_v62, %v434_v59  ;;  %v515_v3 = vpop.f32.mrb[5].mxu0 }
 0x45c   :  { %v524_v4 = vmul.f32 %v515_v3, %v433_v63 }
 0x45d   :  { %816 = vrot.lane.b32.xlu1 %v525_v2, %s1145_s7 }
 0x45e   :  { %814 = vrot.lane.b32.xlu0 %v524_v4, %s1145_s7 }
 0x467   :  { %v987_v17 = vpop.f32.mrb[6].mxu0 }
 0x468   :  { %v668_v19 = vmul.f32 %v987_v17, %v579_v16  ;;  %v658_v20 = vpop.f32.mrb[7].mxu0 }
 0x469   :  { %v667_v21 = vmul.f32 %v658_v20, %v578_v18 }
 0x46a   :  { %824 = vrot.lane.b32.xlu0 %v668_v19, %s1146_s8 }
 0x46b   :  { %v994_v14 = vpop.f32.mrb[8].mxu0  ;;  %822 = vrot.lane.b32.xlu1 %v667_v21, %s1146_s8 }
 0x46c   :  { %v811_v24 = vmul.f32 %v994_v14, %v722_v22  ;;  %v801_v25 = vpop.f32.mrb[9].mxu0 }
 0x46d   :  { %v810_v26 = vmul.f32 %v801_v25, %v721_v23 }
 0x46e   :  { %832 = vrot.lane.b32.xlu0 %v811_v24, %s1144_s3 }
 0x46f   :  { %830 = vrot.lane.b32.xlu1 %v810_v26, %s1144_s3 }
 0x4cf   :  { %v817_v46 = vpop.permute.xlu1 %816 }
 0x4d0   :  { %v815_v44 = vpop.permute.xlu0 %814  ;;  %v838_v52 = vsel %vm836_vm11, %v380_v49, %v817_v46 }
 0x4d1   :  { %v837_v33 = vsel %vm836_vm11, %v379_v51, %v815_v44 }
 0x4dc   :  { %v825_v48 = vpop.permute.xlu0 %824 }
 0x4dd   :  { %v823_v50 = vpop.permute.xlu1 %822  ;;  %v841_v54 = vsel %vm839_vm12, %v838_v52, %v825_v48 }
 0x4de   :  { %v840_v56 = vsel %vm839_vm12, %v837_v33, %v823_v50 }
 0x4e0   :  { %v833_v55 = vpop.permute.xlu0 %832 }
 0x4e1   :  { %v844_v57 = vsel %vm842_vm13, %v841_v54, %v833_v55  ;;  %v831_v58 = vpop.permute.xlu1 %830 }
 0x4e2   :  { %v853_v59 = vadd.f32 %v882_v53, %v844_v57  ;;  %v843_v29 = vsel %vm842_vm13, %v840_v56, %v831_v58 }
 0x4e3   :  { %v852_v60 = vadd.f32 %v882_v53, %v843_v29 }
 0x4e4   :  { %855 = vst [vmem:[#allocation2 + $0x8] sm:$0xff] %v853_v59 }
 0x4e5   :  { %854 = vst [vmem:[#allocation2] sm:$0xff] %v852_v60 }
 0x4e6   :  { %1126 = shalt.err (!%p1123_p4)
}
 0x4e7   :  { %s1127_s15 = scalar_lea.hbm %s1345_s5, 256 }
 0x4e8   :  { %p1128_p5 = scmp.ne.s32.totalorder %s1345_s5, %s1127_s15  ;;  %p1131_p6 = scmp.lt.u32.totalorder %s1127_s15, %s1345_s5 }
 0x4ea   :  { %p1133_p7 = pnand %p1131_p6, %p1128_p5 }
 0x4ec   :  { %1136 = shalt.err (!%p1133_p7)
}
 0x4ed   :  { %s1148_s19 = smov 128   ;;  %s1149_s20 = smov 8  }
 0x4ee   :  { %867 = dma.vmem_to_hbm [thread:$0]  %s862_s12, 256, %s1345_s5, [#allocation3], %s1148_s19, %s1148_s19, %s1149_s20  }
 0x4ef   :  { %1137 = dma.done.wait [#allocation3], 256  }
 0x4f0   :  { %1138 = vsyncadd [#allocation3], 4294967040 }
 0x4f1   :  { %871 = vsyncpa [#allocation3], 1 }

</bundles_post_ra>
